<compile_context>
chip_gen: v6e
topology: v6e:2x2x1
jax: 0.10.0
libtpu: 0.0.40
codegen_flags: <defaults>
</compile_context>

<pallas_src>
import jax
import jax.numpy as jnp
from jax.experimental import pallas as pl
from jax.experimental.pallas import tpu as pltpu


def _round_up(a, b):
    return ((a + b - 1) // b) * b


def _make_kernel(num):
    def kernel(*refs):
        mods = refs[:num]
        w1_ref, b1_ref, w2_ref, b2_ref, out_ref = refs[num:]

        # Hoist small resident operands once per grid step.
        b1 = b1_ref[...]          # (1, hidden)
        b2 = b2_ref[...]          # (1, out_dim)
        w2 = w2_ref[...]          # (hidden, out_dim)

        # Fused concat + fc_1:  cat(mods, -1) @ W1 == sum_k mods[k] @ W1[k]
        acc = jnp.dot(mods[0][...], w1_ref[0],
                      preferred_element_type=jnp.float32)
        for k in range(1, num):
            acc = acc + jnp.dot(mods[k][...], w1_ref[k],
                                preferred_element_type=jnp.float32)

        h = jnp.maximum(acc + b1, 0.0)                     # ReLU
        # TODO(synk): training-mode Dropout(p=0.25) not implemented; inference
        # semantics (identity) are used.

        out = jnp.dot(h, w2, preferred_element_type=jnp.float32) + b2
        out_ref[...] = out.astype(out_ref.dtype)

    return kernel


def concat_mlp_forward(mods_list, params, *, tile_m=512):
    """mods_list: list of (..., in_size) f32 arrays (same leading dims).
    params: w1 (num, in_size, hidden), b1 (1, hidden), w2 (hidden, out), b2 (1, out)."""
    num = len(mods_list)
    in_size = mods_list[0].shape[-1]
    lead_shape = mods_list[0].shape[:-1]
    M = 1
    for d in lead_shape:
        M *= d

    w1, b1, w2, b2 = params["w1"], params["b1"], params["w2"], params["b2"]
    hidden = w1.shape[-1]
    out_dim = w2.shape[-1]

    # Flatten leading dims into rows (feature-last 2D slabs).
    mods2d = [m.reshape(M, in_size).astype(jnp.float32) for m in mods_list]

    # Row tile: multiple of 8 (f32 sublane), capped by M; pad rows if needed.
    tm = min(_round_up(tile_m, 8), _round_up(M, 8))
    Mp = _round_up(M, tm)
    if Mp != M:
        pad = Mp - M
        mods2d = [jnp.pad(m, ((0, pad), (0, 0))) for m in mods2d]

    grid = (Mp // tm,)

    # Tiled row streams.
    row_spec = pl.BlockSpec((tm, in_size), lambda i: (i, 0))
    # Weights/biases: constant block index -> loaded once, resident in VMEM.
    w1_spec = pl.BlockSpec(w1.shape, lambda i: (0, 0, 0))
    b1_spec = pl.BlockSpec(b1.shape, lambda i: (0, 0))
    w2_spec = pl.BlockSpec(w2.shape, lambda i: (0, 0))
    b2_spec = pl.BlockSpec(b2.shape, lambda i: (0, 0))

    flops = 2 * Mp * (num * in_size * hidden + hidden * out_dim)
    bytes_accessed = 4 * (Mp * (num * in_size + out_dim)
                          + num * in_size * hidden + hidden
                          + hidden * out_dim + out_dim)

    out = pl.pallas_call(
        _make_kernel(num),
        out_shape=jax.ShapeDtypeStruct((Mp, out_dim), jnp.float32),
        grid=grid,
        in_specs=[row_spec] * num + [w1_spec, b1_spec, w2_spec, b2_spec],
        out_specs=pl.BlockSpec((tm, out_dim), lambda i: (i, 0)),
        compiler_params=pltpu.CompilerParams(
            dimension_semantics=("parallel",),
            vmem_limit_bytes=64 << 20),
        cost_estimate=pl.CostEstimate(
            flops=flops, transcendentals=0, bytes_accessed=bytes_accessed),
    )(*mods2d, w1, b1, w2, b2)

    return out[:M].reshape(*lead_shape, out_dim)


def concat_mlp_reference(mods_list, p):
    """Pure-JAX reference matching the PyTorch module (inference mode)."""
    x = jnp.concatenate(mods_list, axis=-1)
    num, in_size, hidden = p["w1"].shape
    w1_flat = p["w1"].reshape(num * in_size, hidden)
    h = jnp.maximum(x @ w1_flat + p["b1"], 0.0)
    return h @ p["w2"] + p["b2"]


def init_params(key, num, in_size, hidden, output_dim):
    k1, k2 = jax.random.split(key)
    scale = 0.1
    return {
        "w1": scale * jax.random.normal(k1, (num, in_size, hidden), jnp.float32),
        "b1": jnp.zeros((1, hidden), jnp.float32),
        "w2": scale * jax.random.normal(k2, (hidden, output_dim), jnp.float32),
        "b2": jnp.zeros((1, output_dim), jnp.float32),
    }


if __name__ == "__main__":
    key = jax.random.PRNGKey(0)
    batch, seq = 2, 128            # M = 256 rows
    in_size, num, output_dim = 16, 4, 16
    hidden = in_size * (num // 2)  # = 32, as in the module

    keys = jax.random.split(key, num + 1)
    mods_list = [jax.random.normal(keys[i], (batch, seq, in_size), jnp.float32)
                 for i in range(num)]
    params = init_params(keys[num], num, in_size, hidden, output_dim)

    out = concat_mlp_forward(mods_list, params, tile_m=128)  # 2 grid steps
    out = jax.block_until_ready(out)

    ref = concat_mlp_reference(mods_list, params)
    assert out.shape == (batch, seq, output_dim)
    assert jnp.allclose(out, ref, atol=1e-5, rtol=1e-5), "mismatch vs reference"
    print("KERNEL_OK")
</pallas_src>

<mosaic_0001>
module attributes {stable_mosaic.version = 11 : i64} {
  func.func @kernel(%arg0: i32, %arg1: memref<128x16xf32, #tpu.memory_space<vmem>>, %arg2: memref<128x16xf32, #tpu.memory_space<vmem>>, %arg3: memref<128x16xf32, #tpu.memory_space<vmem>>, %arg4: memref<128x16xf32, #tpu.memory_space<vmem>>, %arg5: memref<4x16x32xf32, #tpu.memory_space<vmem>>, %arg6: memref<1x32xf32, #tpu.memory_space<vmem>>, %arg7: memref<32x16xf32, #tpu.memory_space<vmem>>, %arg8: memref<1x16xf32, #tpu.memory_space<vmem>>, %arg9: memref<128x16xf32, #tpu.memory_space<vmem>>) attributes {dimension_semantics = [#tpu.dimension_semantics<parallel>], iteration_bounds = array<i64: 2>, scalar_prefetch = 0 : i64, scratch_operands = 0 : i64, tpu.core_type = #tpu.core_type<tc>, window_params = [{transform_indices = @transform_0, window_bounds = array<i64: 128, 16>}, {transform_indices = @transform_1, window_bounds = array<i64: 128, 16>}, {transform_indices = @transform_2, window_bounds = array<i64: 128, 16>}, {transform_indices = @transform_3, window_bounds = array<i64: 128, 16>}, {pipeline_mode = #tpu.pipeline_mode<synchronous>, transform_indices = @transform_4, window_bounds = array<i64: 4, 16, 32>}, {pipeline_mode = #tpu.pipeline_mode<synchronous>, transform_indices = @transform_5, window_bounds = array<i64: 1, 32>}, {pipeline_mode = #tpu.pipeline_mode<synchronous>, transform_indices = @transform_6, window_bounds = array<i64: 32, 16>}, {pipeline_mode = #tpu.pipeline_mode<synchronous>, transform_indices = @transform_7, window_bounds = array<i64: 1, 16>}, {transform_indices = @transform_8, window_bounds = array<i64: 128, 16>}]} {
    %c0 = arith.constant 0 : index
    %c0_0 = arith.constant 0 : index
    %0 = vector.load %arg6[%c0, %c0_0] : memref<1x32xf32, #tpu.memory_space<vmem>>, vector<1x32xf32>
    %c0_1 = arith.constant 0 : index
    %c0_2 = arith.constant 0 : index
    %1 = vector.load %arg8[%c0_1, %c0_2] : memref<1x16xf32, #tpu.memory_space<vmem>>, vector<1x16xf32>
    %c0_3 = arith.constant 0 : index
    %c0_4 = arith.constant 0 : index
    %2 = vector.load %arg7[%c0_3, %c0_4] : memref<32x16xf32, #tpu.memory_space<vmem>>, vector<32x16xf32>
    %c0_5 = arith.constant 0 : index
    %c0_6 = arith.constant 0 : index
    %3 = vector.load %arg1[%c0_5, %c0_6] : memref<128x16xf32, #tpu.memory_space<vmem>>, vector<128x16xf32>
    %c0_7 = arith.constant 0 : index
    %c0_8 = arith.constant 0 : index
    %c0_9 = arith.constant 0 : index
    %4 = vector.load %arg5[%c0_7, %c0_8, %c0_9] : memref<4x16x32xf32, #tpu.memory_space<vmem>>, vector<1x16x32xf32>
    %5 = vector.shape_cast %4 : vector<1x16x32xf32> to vector<16x32xf32>
    %cst = arith.constant dense<0.000000e+00> : vector<128x32xf32>
    %6 = tpu.matmul %3, %5, %cst {dimension_numbers = #tpu.dot_dimension_numbers<[1], [0], [0], [1], [0, 0, 1, 1], [], []>} : vector<128x16xf32>, vector<16x32xf32>, vector<128x32xf32> -> vector<128x32xf32>
    %c0_10 = arith.constant 0 : index
    %c0_11 = arith.constant 0 : index
    %7 = vector.load %arg2[%c0_10, %c0_11] : memref<128x16xf32, #tpu.memory_space<vmem>>, vector<128x16xf32>
    %c1 = arith.constant 1 : index
    %c0_12 = arith.constant 0 : index
    %c0_13 = arith.constant 0 : index
    %8 = vector.load %arg5[%c1, %c0_12, %c0_13] : memref<4x16x32xf32, #tpu.memory_space<vmem>>, vector<1x16x32xf32>
    %9 = vector.shape_cast %8 : vector<1x16x32xf32> to vector<16x32xf32>
    %cst_14 = arith.constant dense<0.000000e+00> : vector<128x32xf32>
    %10 = tpu.matmul %7, %9, %cst_14 {dimension_numbers = #tpu.dot_dimension_numbers<[1], [0], [0], [1], [0, 0, 1, 1], [], []>} : vector<128x16xf32>, vector<16x32xf32>, vector<128x32xf32> -> vector<128x32xf32>
    %11 = arith.addf %6, %10 : vector<128x32xf32>
    %c0_15 = arith.constant 0 : index
    %c0_16 = arith.constant 0 : index
    %12 = vector.load %arg3[%c0_15, %c0_16] : memref<128x16xf32, #tpu.memory_space<vmem>>, vector<128x16xf32>
    %c2 = arith.constant 2 : index
    %c0_17 = arith.constant 0 : index
    %c0_18 = arith.constant 0 : index
    %13 = vector.load %arg5[%c2, %c0_17, %c0_18] : memref<4x16x32xf32, #tpu.memory_space<vmem>>, vector<1x16x32xf32>
    %14 = vector.shape_cast %13 : vector<1x16x32xf32> to vector<16x32xf32>
    %cst_19 = arith.constant dense<0.000000e+00> : vector<128x32xf32>
    %15 = tpu.matmul %12, %14, %cst_19 {dimension_numbers = #tpu.dot_dimension_numbers<[1], [0], [0], [1], [0, 0, 1, 1], [], []>} : vector<128x16xf32>, vector<16x32xf32>, vector<128x32xf32> -> vector<128x32xf32>
    %16 = arith.addf %11, %15 : vector<128x32xf32>
    %c0_20 = arith.constant 0 : index
    %c0_21 = arith.constant 0 : index
    %17 = vector.load %arg4[%c0_20, %c0_21] : memref<128x16xf32, #tpu.memory_space<vmem>>, vector<128x16xf32>
    %c3 = arith.constant 3 : index
    %c0_22 = arith.constant 0 : index
    %c0_23 = arith.constant 0 : index
    %18 = vector.load %arg5[%c3, %c0_22, %c0_23] : memref<4x16x32xf32, #tpu.memory_space<vmem>>, vector<1x16x32xf32>
    %19 = vector.shape_cast %18 : vector<1x16x32xf32> to vector<16x32xf32>
    %cst_24 = arith.constant dense<0.000000e+00> : vector<128x32xf32>
    %20 = tpu.matmul %17, %19, %cst_24 {dimension_numbers = #tpu.dot_dimension_numbers<[1], [0], [0], [1], [0, 0, 1, 1], [], []>} : vector<128x16xf32>, vector<16x32xf32>, vector<128x32xf32> -> vector<128x32xf32>
    %21 = arith.addf %16, %20 : vector<128x32xf32>
    %22 = vector.broadcast %0 : vector<1x32xf32> to vector<128x32xf32>
    %23 = arith.addf %21, %22 : vector<128x32xf32>
    %cst_25 = arith.constant 0.000000e+00 : f32
    %24 = vector.broadcast %cst_25 : f32 to vector<128x32xf32>
    %25 = arith.maximumf %23, %24 : vector<128x32xf32>
    %cst_26 = arith.constant dense<0.000000e+00> : vector<128x16xf32>
    %26 = tpu.matmul %25, %2, %cst_26 {dimension_numbers = #tpu.dot_dimension_numbers<[1], [0], [0], [1], [0, 0, 1, 1], [], []>} : vector<128x32xf32>, vector<32x16xf32>, vector<128x16xf32> -> vector<128x16xf32>
    %27 = vector.broadcast %1 : vector<1x16xf32> to vector<128x16xf32>
    %28 = arith.addf %26, %27 : vector<128x16xf32>
    %c0_27 = arith.constant 0 : index
    %c0_28 = arith.constant 0 : index
    %29 = vector.load %arg9[%c0_27, %c0_28] : memref<128x16xf32, #tpu.memory_space<vmem>>, vector<128x16xf32>
    tpu.vector_store %arg9[%c0_27, %c0_28], %28 {strides = array<i32>} : memref<128x16xf32, #tpu.memory_space<vmem>>, vector<128x16xf32>,
    return
  }
  func.func @transform_0(%arg0: i32) -> (i32, i32) {
    %c0_i32 = arith.constant 0 : i32
    %c0_i32_0 = arith.constant 0 : i32
    return %arg0, %c0_i32 : i32, i32
  }
  func.func @transform_1(%arg0: i32) -> (i32, i32) {
    %c0_i32 = arith.constant 0 : i32
    %c0_i32_0 = arith.constant 0 : i32
    return %arg0, %c0_i32 : i32, i32
  }
  func.func @transform_2(%arg0: i32) -> (i32, i32) {
    %c0_i32 = arith.constant 0 : i32
    %c0_i32_0 = arith.constant 0 : i32
    return %arg0, %c0_i32 : i32, i32
  }
  func.func @transform_3(%arg0: i32) -> (i32, i32) {
    %c0_i32 = arith.constant 0 : i32
    %c0_i32_0 = arith.constant 0 : i32
    return %arg0, %c0_i32 : i32, i32
  }
  func.func @transform_4(%arg0: i32) -> (i32, i32, i32) {
    %c0_i32 = arith.constant 0 : i32
    %c0_i32_0 = arith.constant 0 : i32
    %c0_i32_1 = arith.constant 0 : i32
    %c0_i32_2 = arith.constant 0 : i32
    return %c0_i32, %c0_i32_0, %c0_i32_1 : i32, i32, i32
  }
  func.func @transform_5(%arg0: i32) -> (i32, i32) {
    %c0_i32 = arith.constant 0 : i32
    %c0_i32_0 = arith.constant 0 : i32
    %c0_i32_1 = arith.constant 0 : i32
    return %c0_i32, %c0_i32_0 : i32, i32
  }
  func.func @transform_6(%arg0: i32) -> (i32, i32) {
    %c0_i32 = arith.constant 0 : i32
    %c0_i32_0 = arith.constant 0 : i32
    %c0_i32_1 = arith.constant 0 : i32
    return %c0_i32, %c0_i32_0 : i32, i32
  }
  func.func @transform_7(%arg0: i32) -> (i32, i32) {
    %c0_i32 = arith.constant 0 : i32
    %c0_i32_0 = arith.constant 0 : i32
    %c0_i32_1 = arith.constant 0 : i32
    return %c0_i32, %c0_i32_0 : i32, i32
  }
  func.func @transform_8(%arg0: i32) -> (i32, i32) {
    %c0_i32 = arith.constant 0 : i32
    %c0_i32_0 = arith.constant 0 : i32
    return %arg0, %c0_i32 : i32, i32
  }
}

</mosaic_0001>

<bundles_post_ra>
// kernel: tpu_custom_call.1
= control target key start
LH: loop header
LB: loop body
LE: loop exit
PB: predicated region body
PF: predicated region fallthrough
CT: control target
= control target key end

     0   :  { %s2013_s27 = smov 0   ;;  %s2334_s0 = inlined_call_operand.vmem [shape: f32[256,16], index: 0, kind: input, shape index: {}]   ;;  %s2335_s1 = inlined_call_operand.vmem [shape: f32[256,16], index: 1, kind: input, shape index: {}]   ;;  %s2336_s2 = inlined_call_operand.vmem [shape: f32[256,16], index: 2, kind: input, shape index: {}]   ;;  %s2337_s3 = inlined_call_operand.vmem [shape: f32[256,16], index: 3, kind: input, shape index: {}]   ;;  %s2338_s4 = inlined_call_operand.vmem [shape: f32[4,16,32], index: 4, kind: input, shape index: {}]   ;;  %s2339_s5 = inlined_call_operand.vmem [shape: f32[1,32], index: 5, kind: input, shape index: {}]   ;;  %s2340_s6 = inlined_call_operand.vmem [shape: f32[32,16], index: 6, kind: input, shape index: {}]   ;;  %s2341_s7 = inlined_call_operand.vmem [shape: f32[1,16], index: 7, kind: input, shape index: {}]   ;;  %s2342_s8 = inlined_call_operand.vmem [shape: f32[256,16], index: 8, kind: output, shape index: {}]  }
   0x1 LB: > { %s1607_s28 = sadd.s32 4294967295, %s1966_s27   ;;  %p1611_p0 = scmp.ge.s32.totalorder %s1966_s27, 1  ;;  %s1966_s27 = sphi %s2013_s27, %s18_s27  }
   0x2   : > { %p296_p1 = scmp.lt.s32.totalorder %s1966_s27, 3 }
   0x4   : > { %p297_p2 = pnand %p1611_p0, %p296_p1 }
   0x5   : > { %s1612_s11 = sshll.u32 (!%p297_p2), %s1607_s28, 4 }
   0x6   : > { %300 = sbr.rel (%p297_p2) target bundleno = 494 (0x1ee), region = 52  ;;  %p346_p3 = scmp.lt.s32.totalorder (!%p297_p2), %s1612_s11, 31 }
   0xb   : > { %v1623_v0 = vld [vmem:[%s2338_s4 + $0x18] sm:$0xff]  ;;  %v1622_v1 = vld [vmem:[%s2338_s4 + $0x10] sm:$0xff]  ;;  %v398_v2 = vld [vmem:[%s2338_s4 + $0x8] sm:$0xff]  ;;  %s2344_s11 = smov (!%p346_p3, %s1612_s11), 31  ;;  %vm418_vm0 = vcmask 130048   ;;  %vm1305_vm1 = vcmask 261120  }
   0xc   : > { %1948 = vmatprep.subr.mxu1 %v1623_v0  ;;  %1804 = vmatprep.subr.mxu0 %v1623_v0  ;;  %v1657_v3 = vld [vmem:[%s2338_s4 + $0x28] sm:$0xff]  ;;  %s2033_s16 = sshll.u32 %s2344_s11, 3  ;;  %v397_v9 = vld [vmem:[%s2338_s4] sm:$0xff]  ;;  %v1675_v15 = vld [vmem:[%s2338_s4 + $0x38] sm:$0xff] }
   0xd   : > { %1950 = vmatpush3.msra.mxu1 %v1623_v0  ;;  %1805 = vmatpush3.msra.mxu0 %v1623_v0  ;;  %s2039_s19 = scalar_lea.vmem %s2335_s1, %s2033_s16  ;;  %v1656_v16 = vld [vmem:[%s2338_s4 + $0x20] sm:$0xff]  ;;  %s2078_s29 = scalar_lea.vmem %s2334_s0, %s2033_s16  ;;  %v1674_v29 = vld [vmem:[%s2338_s4 + $0x30] sm:$0xff] }
   0xe   : > { %1949 = vmatprep.subr.mxu1 %v1622_v1  ;;  %1806 = vmatprep.subr.mxu0 %v1622_v1  ;;  %v407_v4 = vld [vmem:[%s2039_s19 + $0x40] sm:$0xff]  ;;  %v408_v5 = vld [vmem:[%s2039_s19 + $0x48] sm:$0xff]  ;;  %v409_v8 = vld [vmem:[%s2039_s19 + $0x50] sm:$0xff]  ;;  %s2084_s10 = scalar_lea.vmem %s2336_s2, %s2033_s16  ;;  %s2157_s15 = scalar_lea.vmem %s2337_s3, %s2033_s16 }
   0xf   : > { %1951 = vmatpush3.msra.mxu1 %v1622_v1  ;;  %1807 = vmatpush3.msra.mxu0 %v1622_v1  ;;  %v399_v6 = vld [vmem:[%s2039_s19] sm:$0xff]  ;;  %v400_v7 = vld [vmem:[%s2039_s19 + $0x8] sm:$0xff]  ;;  %v401_v10 = vld [vmem:[%s2039_s19 + $0x10] sm:$0xff] }
  0x10   : > { %1832 = vmatprep.subr.mxu1 %v398_v2  ;;  %1860 = vmatprep.subr.mxu0 %v1657_v3  ;;  %v410_v11 = vld [vmem:[%s2039_s19 + $0x58] sm:$0xff]  ;;  %v411_v13 = vld [vmem:[%s2039_s19 + $0x60] sm:$0xff]  ;;  %v412_v17 = vld [vmem:[%s2039_s19 + $0x68] sm:$0xff] }
  0x11   : > { %1820 = vmatprep.mubr.msk.f32.mxu1 %vm418_vm0, %v407_v4  ;;  %1808 = vmatprep.mubr.msk.f32.mxu0 %vm418_vm0, %v399_v6  ;;  %v402_v12 = vld [vmem:[%s2039_s19 + $0x18] sm:$0xff]  ;;  %v403_v14 = vld [vmem:[%s2039_s19 + $0x20] sm:$0xff]  ;;  %v404_v18 = vld [vmem:[%s2039_s19 + $0x28] sm:$0xff] }
  0x12   : > { %1821 = vmatmul.mubr.msk.f32.vlgmr.msra.gmra.mxu1 %vm418_vm0, %v408_v5  ;;  %1809 = vmatmul.mubr.msk.f32.vlgmr.msra.gmra.mxu0 %vm418_vm0, %v400_v7  ;;  %v413_v19 = vld [vmem:[%s2039_s19 + $0x70] sm:$0xff]  ;;  %v414_v21 = vld [vmem:[%s2039_s19 + $0x78] sm:$0xff]  ;;  %v381_v23 = vld [vmem:[%s2078_s29] sm:$0xff] }
  0x13   : > { %1833 = vmatpush3.msra.mxu1 %v398_v2  ;;  %1823 = vmatprep.mubr.msk.f32.mxu1 %vm418_vm0, %v409_v8  ;;  %v405_v20 = vld [vmem:[%s2039_s19 + $0x30] sm:$0xff]  ;;  %v406_v22 = vld [vmem:[%s2039_s19 + $0x38] sm:$0xff]  ;;  %v805_v24 = vld [vmem:[%s2084_s10] sm:$0xff] }
  0x14   : > { %1811 = vmatprep.mubr.msk.f32.mxu0 %vm418_vm0, %v401_v10  ;;  %1834 = vmatprep.subr.mxu1 %v397_v9  ;;  %v382_v25 = vld [vmem:[%s2078_s29 + $0x8] sm:$0xff]  ;;  %v383_v27 = vld [vmem:[%s2078_s29 + $0x10] sm:$0xff]  ;;  %v384_v30 = vld [vmem:[%s2078_s29 + $0x18] sm:$0xff] }
  0x15   : > { %1835 = vmatpush3.msra.mxu1 %v397_v9  ;;  %1861 = vmatpush3.msra.mxu0 %v1657_v3  ;;  %v806_v26 = vld [vmem:[%s2084_s10 + $0x8] sm:$0xff]  ;;  %v807_v28 = vld [vmem:[%s2084_s10 + $0x10] sm:$0xff]  ;;  %v808_v31 = vld [vmem:[%s2084_s10 + $0x18] sm:$0xff] }
  0x16   : > { %1824 = vmatmul.mubr.msk.f32.gmra.mxu1 %vm418_vm0, %v410_v11  ;;  %1812 = vmatmul.mubr.msk.f32.gmra.mxu0 %vm418_vm0, %v402_v12  ;;  %v385_v32 = vld [vmem:[%s2078_s29 + $0x20] sm:$0xff]  ;;  %v386_v34 = vld [vmem:[%s2078_s29 + $0x28] sm:$0xff]  ;;  %v387_v36 = vld [vmem:[%s2078_s29 + $0x30] sm:$0xff] }
  0x17   : > { %1826 = vmatprep.mubr.msk.f32.mxu1 %vm418_vm0, %v411_v13  ;;  %1814 = vmatprep.mubr.msk.f32.mxu0 %vm418_vm0, %v403_v14  ;;  %v809_v33 = vld [vmem:[%s2084_s10 + $0x20] sm:$0xff]  ;;  %v810_v35 = vld [vmem:[%s2084_s10 + $0x28] sm:$0xff]  ;;  %v811_v37 = vld [vmem:[%s2084_s10 + $0x30] sm:$0xff] }
  0x18   : > { %1888 = vmatprep.subr.mxu1 %v1675_v15  ;;  %1862 = vmatprep.subr.mxu0 %v1656_v16  ;;  %v388_v38 = vld [vmem:[%s2078_s29 + $0x38] sm:$0xff]  ;;  %v389_v40 = vld [vmem:[%s2078_s29 + $0x40] sm:$0xff]  ;;  %v390_v42 = vld [vmem:[%s2078_s29 + $0x48] sm:$0xff] }
  0x19   : > { %1863 = vmatpush3.msra.mxu0 %v1656_v16  ;;  %v812_v39 = vld [vmem:[%s2084_s10 + $0x38] sm:$0xff]  ;;  %v813_v41 = vld [vmem:[%s2084_s10 + $0x40] sm:$0xff]  ;;  %v814_v43 = vld [vmem:[%s2084_s10 + $0x48] sm:$0xff] }
  0x1a   : > { %1827 = vmatmul.mubr.msk.f32.gmra.mxu1 %vm418_vm0, %v412_v17  ;;  %1815 = vmatmul.mubr.msk.f32.gmra.mxu0 %vm418_vm0, %v404_v18  ;;  %v391_v44 = vld [vmem:[%s2078_s29 + $0x50] sm:$0xff]  ;;  %v392_v46 = vld [vmem:[%s2078_s29 + $0x58] sm:$0xff]  ;;  %v393_v48 = vld [vmem:[%s2078_s29 + $0x60] sm:$0xff] }
  0x1b   : > { %1829 = vmatprep.mubr.msk.f32.mxu1 %vm418_vm0, %v413_v19  ;;  %1817 = vmatprep.mubr.msk.f32.mxu0 %vm418_vm0, %v405_v20  ;;  %v815_v45 = vld [vmem:[%s2084_s10 + $0x50] sm:$0xff]  ;;  %v816_v47 = vld [vmem:[%s2084_s10 + $0x58] sm:$0xff]  ;;  %v817_v49 = vld [vmem:[%s2084_s10 + $0x60] sm:$0xff] }
  0x1c   : > { %v394_v50 = vld [vmem:[%s2078_s29 + $0x68] sm:$0xff]  ;;  %v395_v52 = vld [vmem:[%s2078_s29 + $0x70] sm:$0xff]  ;;  %v396_v54 = vld [vmem:[%s2078_s29 + $0x78] sm:$0xff] }
  0x1d   : > { %v818_v51 = vld [vmem:[%s2084_s10 + $0x68] sm:$0xff]  ;;  %v819_v53 = vld [vmem:[%s2084_s10 + $0x70] sm:$0xff]  ;;  %v820_v55 = vld [vmem:[%s2084_s10 + $0x78] sm:$0xff]  ;;  %s2297_s10 = scalar_lea.vmem %s2342_s8, %s2033_s16 }
  0x1e   : > { %1830 = vmatmul.mubr.msk.f32.gmra.mxu1 %vm418_vm0, %v414_v21  ;;  %1818 = vmatmul.mubr.msk.f32.gmra.mxu0 %vm418_vm0, %v406_v22  ;;  %v1033_v56 = vld [vmem:[%s2157_s15] sm:$0xff]  ;;  %v1034_v57 = vld [vmem:[%s2157_s15 + $0x8] sm:$0xff]  ;;  %v1035_v58 = vld [vmem:[%s2157_s15 + $0x10] sm:$0xff] }
  0x1f   : > { %1836 = vmatprep.mubr.msk.f32.mxu1 %vm418_vm0, %v381_v23  ;;  %1864 = vmatprep.mubr.msk.f32.mxu0 %vm418_vm0, %v805_v24  ;;  %v1036_v59 = vld [vmem:[%s2157_s15 + $0x18] sm:$0xff]  ;;  %v1037_v60 = vld [vmem:[%s2157_s15 + $0x20] sm:$0xff]  ;;  %v1038_v61 = vld [vmem:[%s2157_s15 + $0x28] sm:$0xff] }
  0x20   : > { %v1039_v62 = vld [vmem:[%s2157_s15 + $0x30] sm:$0xff]  ;;  %v1040_v63 = vld [vmem:[%s2157_s15 + $0x38] sm:$0xff]  ;;  %v1041_v0 = vld [vmem:[%s2157_s15 + $0x40] sm:$0xff] }
  0x21   : > { %v1042_v1 = vld [vmem:[%s2157_s15 + $0x48] sm:$0xff]  ;;  %v1043_v2 = vld [vmem:[%s2157_s15 + $0x50] sm:$0xff]  ;;  %v1044_v3 = vld [vmem:[%s2157_s15 + $0x58] sm:$0xff] }
  0x22   : > { %1837 = vmatmul.mubr.msk.f32.vlgmr.msra.gmra.mxu1 %vm418_vm0, %v382_v25  ;;  %1865 = vmatmul.mubr.msk.f32.vlgmr.msra.gmra.mxu0 %vm418_vm0, %v806_v26  ;;  %v1045_v4 = vld [vmem:[%s2157_s15 + $0x60] sm:$0xff]  ;;  %v1046_v5 = vld [vmem:[%s2157_s15 + $0x68] sm:$0xff]  ;;  %v1047_v6 = vld [vmem:[%s2157_s15 + $0x70] sm:$0xff] }
  0x23   : > { %1889 = vmatpush3.msra.mxu1 %v1675_v15  ;;  %1839 = vmatprep.mubr.msk.f32.mxu1 %vm418_vm0, %v383_v27  ;;  %v1048_v7 = vld [vmem:[%s2157_s15 + $0x78] sm:$0xff]  ;;  %v379_v9 = vld [vmem:[%s2340_s6 + $0x10] sm:$0xff]  ;;  %v378_v10 = vld [vmem:[%s2340_s6 + $0x8] sm:$0xff] }
  0x24   : > { %1867 = vmatprep.mubr.msk.f32.mxu0 %vm418_vm0, %v807_v28  ;;  %1890 = vmatprep.subr.mxu1 %v1674_v29  ;;  %v380_v8 = vld [vmem:[%s2340_s6 + $0x18] sm:$0xff]  ;;  %v377_v11 = vld [vmem:[%s2340_s6] sm:$0xff] }
  0x25   : > { %1891 = vmatpush3.msra.mxu1 %v1674_v29  ;;  %1916 = vmatprep.subr.mxu0 %v380_v8 }
  0x26   : > { %1840 = vmatmul.mubr.msk.f32.gmra.mxu1 %vm418_vm0, %v384_v30  ;;  %1868 = vmatmul.mubr.msk.f32.gmra.mxu0 %vm418_vm0, %v808_v31 }
  0x27   : > { %1842 = vmatprep.mubr.msk.f32.mxu1 %vm418_vm0, %v385_v32  ;;  %1870 = vmatprep.mubr.msk.f32.mxu0 %vm418_vm0, %v809_v33 }
  0x28   : > { %1917 = vmatpush3.msra.mxu0 %v380_v8 }
  0x29   : > { %1918 = vmatprep.subr.mxu0 %v379_v9 }
  0x2a   : > { %1843 = vmatmul.mubr.msk.f32.gmra.mxu1 %vm418_vm0, %v386_v34  ;;  %1871 = vmatmul.mubr.msk.f32.gmra.mxu0 %vm418_vm0, %v810_v35 }
  0x2b   : > { %1845 = vmatprep.mubr.msk.f32.mxu1 %vm418_vm0, %v387_v36  ;;  %1873 = vmatprep.mubr.msk.f32.mxu0 %vm418_vm0, %v811_v37 }
  0x2c   : > { %1919 = vmatpush3.msra.mxu0 %v379_v9 }
  0x2d   : > { %1920 = vmatprep.subr.mxu0 %v378_v10 }
  0x2e   : > { %1846 = vmatmul.mubr.msk.f32.gmra.mxu1 %vm418_vm0, %v388_v38  ;;  %1874 = vmatmul.mubr.msk.f32.gmra.mxu0 %vm418_vm0, %v812_v39 }
  0x2f   : > { %1848 = vmatprep.mubr.msk.f32.mxu1 %vm418_vm0, %v389_v40  ;;  %1876 = vmatprep.mubr.msk.f32.mxu0 %vm418_vm0, %v813_v41 }
  0x30   : > { %1921 = vmatpush3.msra.mxu0 %v378_v10 }
  0x31   : > { %1922 = vmatprep.subr.mxu0 %v377_v11 }
  0x32   : > { %1849 = vmatmul.mubr.msk.f32.gmra.mxu1 %vm418_vm0, %v390_v42  ;;  %1877 = vmatmul.mubr.msk.f32.gmra.mxu0 %vm418_vm0, %v814_v43 }
  0x33   : > { %1851 = vmatprep.mubr.msk.f32.mxu1 %vm418_vm0, %v391_v44  ;;  %1879 = vmatprep.mubr.msk.f32.mxu0 %vm418_vm0, %v815_v45 }
  0x34   : > { %1923 = vmatpush3.msra.mxu0 %v377_v11 }
  0x36   : > { %1852 = vmatmul.mubr.msk.f32.gmra.mxu1 %vm418_vm0, %v392_v46  ;;  %1880 = vmatmul.mubr.msk.f32.gmra.mxu0 %vm418_vm0, %v816_v47 }
  0x37   : > { %1854 = vmatprep.mubr.msk.f32.mxu1 %vm418_vm0, %v393_v48  ;;  %1882 = vmatprep.mubr.msk.f32.mxu0 %vm418_vm0, %v817_v49 }
  0x3a   : > { %1855 = vmatmul.mubr.msk.f32.gmra.mxu1 %vm418_vm0, %v394_v50  ;;  %1883 = vmatmul.mubr.msk.f32.gmra.mxu0 %vm418_vm0, %v818_v51 }
  0x3b   : > { %1857 = vmatprep.mubr.msk.f32.mxu1 %vm418_vm0, %v395_v52  ;;  %1885 = vmatprep.mubr.msk.f32.mxu0 %vm418_vm0, %v819_v53 }
  0x3e   : > { %1858 = vmatmul.mubr.msk.f32.gmra.mxu1 %vm418_vm0, %v396_v54  ;;  %1886 = vmatmul.mubr.msk.f32.gmra.mxu0 %vm418_vm0, %v820_v55 }
  0x3f   : > { %1892 = vmatprep.mubr.msk.f32.mxu1 %vm418_vm0, %v1033_v56 }
  0x42   : > { %1893 = vmatmul.mubr.msk.f32.vlgmr.msra.gmra.mxu1 %vm418_vm0, %v1034_v57 }
  0x43   : > { %1895 = vmatprep.mubr.msk.f32.mxu1 %vm418_vm0, %v1035_v58 }
  0x46   : > { %1896 = vmatmul.mubr.msk.f32.gmra.mxu1 %vm418_vm0, %v1036_v59 }
  0x47   : > { %1898 = vmatprep.mubr.msk.f32.mxu1 %vm418_vm0, %v1037_v60  ;;  %v2242_v60 = vld [vmem:[%s2339_s5] ss:$0 sm:$0xff] }
  0x4a   : > { %1899 = vmatmul.mubr.msk.f32.gmra.mxu1 %vm418_vm0, %v1038_v61 }
  0x4b   : > { %1901 = vmatprep.mubr.msk.f32.mxu1 %vm418_vm0, %v1039_v62 }
  0x4e   : > { %1902 = vmatmul.mubr.msk.f32.gmra.mxu1 %vm418_vm0, %v1040_v63 }
  0x4f   : > { %1904 = vmatprep.mubr.msk.f32.mxu1 %vm418_vm0, %v1041_v0 }
  0x52   : > { %1905 = vmatmul.mubr.msk.f32.gmra.mxu1 %vm418_vm0, %v1042_v1 }
  0x53   : > { %1907 = vmatprep.mubr.msk.f32.mxu1 %vm418_vm0, %v1043_v2 }
  0x56   : > { %1908 = vmatmul.mubr.msk.f32.gmra.mxu1 %vm418_vm0, %v1044_v3 }
  0x57   : > { %1910 = vmatprep.mubr.msk.f32.mxu1 %vm418_vm0, %v1045_v4 }
  0x5a   : > { %1911 = vmatmul.mubr.msk.f32.gmra.mxu1 %vm418_vm0, %v1046_v5 }
  0x5b   : > { %1913 = vmatprep.mubr.msk.f32.mxu1 %vm418_vm0, %v1047_v6 }
  0x5e   : > { %1914 = vmatmul.mubr.msk.f32.gmra.mxu1 %vm418_vm0, %v1048_v7 }
  0xd2   : > { %v2211_v12 = vpop.f32.mrf.mxu1  ;;  %v1810_v13 = vpop.f32.mrf.mxu0 }
  0xd4   : > { %v2213_v14 = vpop.f32.mrf.mxu1  ;;  %v533_v15 = vpop.f32.mrf.mxu0 }
  0xd6   : > { %v2215_v16 = vpop.f32.mrf.mxu1  ;;  %v1813_v17 = vpop.f32.mrf.mxu0 }
  0xd8   : > { %v2217_v18 = vpop.f32.mrf.mxu1  ;;  %v543_v19 = vpop.f32.mrf.mxu0 }
  0xda   : > { %v2219_v20 = vpop.f32.mrf.mxu1  ;;  %v1816_v21 = vpop.f32.mrf.mxu0 }
  0xdc   : > { %v2221_v22 = vpop.f32.mrf.mxu1  ;;  %v553_v23 = vpop.f32.mrf.mxu0 }
  0xde   : > { %v2223_v24 = vpop.f32.mrf.mxu1  ;;  %v1819_v25 = vpop.f32.mrf.mxu0 }
  0xe0   : > { %v2225_v26 = vpop.f32.mrf.mxu1  ;;  %v563_v27 = vpop.f32.mrf.mxu0 }
  0xe2   : > { %v1838_v28 = vpop.f32.mrf.mxu1  ;;  %v1866_v29 = vpop.f32.mrf.mxu0 }
  0xe3   : > { %v732_v50 = vadd.f32 %v1838_v28, %v1810_v13 }
  0xe4   : > { %v726_v30 = vpop.f32.mrf.mxu1  ;;  %v938_v31 = vpop.f32.mrf.mxu0 }
  0xe5   : > { %v727_v52 = vadd.f32 %v726_v30, %v533_v15  ;;  %v1018_v55 = vadd.f32 %v1866_v29, %v732_v50 }
  0xe6   : > { %v1841_v32 = vpop.f32.mrf.mxu1  ;;  %v1869_v34 = vpop.f32.mrf.mxu0 }
  0xe7   : > { %v742_v56 = vadd.f32 %v1841_v32, %v1813_v17  ;;  %v1017_v58 = vadd.f32 %v938_v31, %v727_v52 }
  0xe8   : > { %v736_v33 = vpop.f32.mrf.mxu1  ;;  %v948_v36 = vpop.f32.mrf.mxu0 }
  0xe9   : > { %v737_v59 = vadd.f32 %v736_v33, %v543_v19  ;;  %v1020_v0 = vadd.f32 %v1869_v34, %v742_v56 }
  0xea   : > { %v1844_v35 = vpop.f32.mrf.mxu1  ;;  %v1872_v39 = vpop.f32.mrf.mxu0 }
  0xeb   : > { %v752_v1 = vadd.f32 %v1844_v35, %v1816_v21  ;;  %v1019_v5 = vadd.f32 %v948_v36, %v737_v59 }
  0xec   : > { %v746_v37 = vpop.f32.mrf.mxu1  ;;  %v958_v42 = vpop.f32.mrf.mxu0 }
  0xed   : > { %v747_v6 = vadd.f32 %v746_v37, %v553_v23  ;;  %v1022_v11 = vadd.f32 %v1872_v39, %v752_v1 }
  0xee   : > { %v1847_v38 = vpop.f32.mrf.mxu1  ;;  %v1875_v45 = vpop.f32.mrf.mxu0 }
  0xef   : > { %v762_v13 = vadd.f32 %v1847_v38, %v1819_v25  ;;  %v1021_v29 = vadd.f32 %v958_v42, %v747_v6 }
  0xf0   : > { %v756_v40 = vpop.f32.mrf.mxu1  ;;  %v968_v48 = vpop.f32.mrf.mxu0 }
  0xf1   : > { %v757_v30 = vadd.f32 %v756_v40, %v563_v27  ;;  %v1024_v34 = vadd.f32 %v1875_v45, %v762_v13 }
  0xf2   : > { %v1850_v41 = vpop.f32.mrf.mxu1  ;;  %v1878_v53 = vpop.f32.mrf.mxu0 }
  0xf3   : > { %v772_v25 = vadd.f32 %v1850_v41, %v2211_v12  ;;  %v1023_v42 = vadd.f32 %v968_v48, %v757_v30 }
  0xf4   : > { %v766_v43 = vpop.f32.mrf.mxu1  ;;  %v978_v62 = vpop.f32.mrf.mxu0 }
  0xf5   : > { %v767_v27 = vadd.f32 %v766_v43, %v2213_v14  ;;  %v1026_v45 = vadd.f32 %v1878_v53, %v772_v25 }
  0xf6   : > { %v2227_v44 = vpop.f32.mrf.mxu1  ;;  %v1881_v9 = vpop.f32.mrf.mxu0 }
  0xf7   : > { %v782_v12 = vadd.f32 %v2227_v44, %v2215_v16  ;;  %v1025_v14 = vadd.f32 %v978_v62, %v767_v27 }
  0xf8   : > { %v2229_v46 = vpop.f32.mrf.mxu1  ;;  %v988_v23 = vpop.f32.mrf.mxu0 }
  0xf9   : > { %v777_v43 = vadd.f32 %v2229_v46, %v2217_v18  ;;  %v1028_v16 = vadd.f32 %v1881_v9, %v782_v12 }
  0xfa   : > { %v2231_v47 = vpop.f32.mrf.mxu1  ;;  %v1884_v52 = vpop.f32.mrf.mxu0 }
  0xfb   : > { %v792_v44 = vadd.f32 %v2231_v47, %v2219_v20  ;;  %v1027_v18 = vadd.f32 %v988_v23, %v777_v43 }
  0xfc   : > { %v2233_v49 = vpop.f32.mrf.mxu1 }
  0xfd   : > { %v787_v46 = vadd.f32 %v2233_v49, %v2221_v22  ;;  %v1030_v20 = vadd.f32 %v1884_v52, %v792_v44 }
  0xfe   : > { %v2235_v51 = vpop.f32.mrf.mxu1 }
  0xff   : > { %v802_v47 = vadd.f32 %v2235_v51, %v2223_v24 }
 0x100   : > { %v2237_v54 = vpop.f32.mrf.mxu1 }
 0x101   : > { %v797_v49 = vadd.f32 %v2237_v54, %v2225_v26 }
 0x102   : > { %v1894_v57 = vpop.f32.mrf.mxu1 }
 0x103   : > { %v1246_v61 = vadd.f32 %v1894_v57, %v1018_v55 }
 0x104   : > { %v1166_v63 = vpop.f32.mrf.mxu1 }
 0x105   : > { %v1245_v2 = vadd.f32 %v1166_v63, %v1017_v58  ;;  %v1268_v3 = vadd.f32 %v2242_v60, %v1246_v61  ;;  %v998_v63 = vpop.f32.mrf.mxu0 }
 0x106   : > { %v1897_v4 = vpop.f32.mrf.mxu1  ;;  %v1029_v22 = vadd.f32 %v998_v63, %v787_v46 }
 0x107   : > { %v1267_v7 = vadd.f32 %v2242_v60, %v1245_v2  ;;  %v1248_v8 = vadd.f32 %v1897_v4, %v1020_v0  ;;  %v1284_v19 = vmax.f32 %v1268_v3, 0.0  ;;  %v1887_v6 = vpop.f32.mrf.mxu0 }
 0x108   : > { %v1176_v10 = vpop.f32.mrf.mxu1  ;;  %v1032_v24 = vadd.f32 %v1887_v6, %v802_v47 }
 0x109   : > { %v1283_v15 = vmax.f32 %v1267_v7, 0.0  ;;  %v1247_v17 = vadd.f32 %v1176_v10, %v1019_v5  ;;  %v1270_v28 = vadd.f32 %v2242_v60, %v1248_v8 }
 0x10a   : > { %v1900_v21 = vpop.f32.mrf.mxu1 }
 0x10b   : > { %v1269_v31 = vadd.f32 %v2242_v60, %v1247_v17  ;;  %v1250_v32 = vadd.f32 %v1900_v21, %v1022_v11  ;;  %1924 = vmatprep.mubr.msk.f32.mxu0 %vm1305_vm1, %v1283_v15  ;;  %v1286_v37 = vmax.f32 %v1270_v28, 0.0 }
 0x10c   : > { %v1186_v33 = vpop.f32.mrf.mxu1  ;;  %1925 = vmatmul.mubr.msk.f32.vlgmr.msra.gmra.mxu0 %vm1305_vm1, %v1284_v19  ;;  %v1008_v19 = vpop.f32.mrf.mxu0 }
 0x10d   : > { %v1285_v35 = vmax.f32 %v1269_v31, 0.0  ;;  %v1249_v36 = vadd.f32 %v1186_v33, %v1021_v29  ;;  %v1272_v38 = vadd.f32 %v2242_v60, %v1250_v32  ;;  %v1031_v32 = vadd.f32 %v1008_v19, %v797_v49 }
 0x10e   : > { %v1903_v39 = vpop.f32.mrf.mxu1 }
 0x10f   : > { %v1271_v40 = vadd.f32 %v2242_v60, %v1249_v36  ;;  %v1252_v50 = vadd.f32 %v1903_v39, %v1024_v34  ;;  %1927 = vmatprep.mubr.msk.f32.mxu0 %vm1305_vm1, %v1285_v35  ;;  %v1288_v57 = vmax.f32 %v1272_v38, 0.0  ;;  %v1693_v39 = vld [vmem:[%s2341_s7] ss:$0 sm:$0xff] }
 0x110   : > { %v1196_v55 = vpop.f32.mrf.mxu1  ;;  %1928 = vmatmul.mubr.msk.f32.gmra.mxu0 %vm1305_vm1, %v1286_v37 }
 0x111   : > { %v1287_v41 = vmax.f32 %v1271_v40, 0.0  ;;  %v1251_v56 = vadd.f32 %v1196_v55, %v1023_v42  ;;  %v1274_v48 = vadd.f32 %v2242_v60, %v1252_v50 }
 0x112   : > { %v1906_v58 = vpop.f32.mrf.mxu1 }
 0x113   : > { %v1273_v59 = vadd.f32 %v2242_v60, %v1251_v56  ;;  %v1254_v61 = vadd.f32 %v1906_v58, %v1026_v45  ;;  %1930 = vmatprep.mubr.msk.f32.mxu0 %vm1305_vm1, %v1287_v41  ;;  %v1290_v2 = vmax.f32 %v1274_v48, 0.0 }
 0x114   : > { %v1206_v53 = vpop.f32.mrf.mxu1  ;;  %1931 = vmatmul.mubr.msk.f32.gmra.mxu0 %vm1305_vm1, %v1288_v57 }
 0x115   : > { %v1289_v0 = vmax.f32 %v1273_v59, 0.0  ;;  %v1253_v1 = vadd.f32 %v1206_v53, %v1025_v14  ;;  %v1276_v62 = vadd.f32 %v2242_v60, %v1254_v61 }
 0x116   : > { %v1909_v3 = vpop.f32.mrf.mxu1 }
 0x117   : > { %v1275_v4 = vadd.f32 %v2242_v60, %v1253_v1  ;;  %v1256_v5 = vadd.f32 %v1909_v3, %v1028_v16  ;;  %1933 = vmatprep.mubr.msk.f32.mxu0 %vm1305_vm1, %v1289_v0  ;;  %v1292_v10 = vmax.f32 %v1276_v62, 0.0 }
 0x118   : > { %v1216_v7 = vpop.f32.mrf.mxu1  ;;  %1934 = vmatmul.mubr.msk.f32.gmra.mxu0 %vm1305_vm1, %v1290_v2 }
 0x119   : > { %v1291_v8 = vmax.f32 %v1275_v4, 0.0  ;;  %v1255_v9 = vadd.f32 %v1216_v7, %v1027_v18  ;;  %v1278_v11 = vadd.f32 %v2242_v60, %v1256_v5 }
 0x11a   : > { %v1912_v13 = vpop.f32.mrf.mxu1 }
 0x11b   : > { %v1277_v15 = vadd.f32 %v2242_v60, %v1255_v9  ;;  %v1258_v17 = vadd.f32 %v1912_v13, %v1030_v20  ;;  %1936 = vmatprep.mubr.msk.f32.mxu0 %vm1305_vm1, %v1291_v8  ;;  %v1294_v29 = vmax.f32 %v1278_v11, 0.0 }
 0x11c   : > { %v1226_v28 = vpop.f32.mrf.mxu1  ;;  %1937 = vmatmul.mubr.msk.f32.gmra.mxu0 %vm1305_vm1, %v1292_v10 }
 0x11d   : > { %v1293_v51 = vmax.f32 %v1277_v15, 0.0  ;;  %v1257_v21 = vadd.f32 %v1226_v28, %v1029_v22  ;;  %v1280_v30 = vadd.f32 %v2242_v60, %v1258_v17 }
 0x11e   : > { %v1915_v31 = vpop.f32.mrf.mxu1 }
 0x11f   : > { %v1279_v23 = vadd.f32 %v2242_v60, %v1257_v21  ;;  %v1260_v26 = vadd.f32 %v1915_v31, %v1032_v24  ;;  %1939 = vmatprep.mubr.msk.f32.mxu0 %vm1305_vm1, %v1293_v51  ;;  %v1296_v25 = vmax.f32 %v1280_v30, 0.0 }
 0x120   : > { %v1236_v54 = vpop.f32.mrf.mxu1  ;;  %1940 = vmatmul.mubr.msk.f32.gmra.mxu0 %vm1305_vm1, %v1294_v29 }
 0x121   : > { %v1295_v33 = vmax.f32 %v1279_v23, 0.0  ;;  %v1259_v34 = vadd.f32 %v1236_v54, %v1031_v32  ;;  %v1282_v35 = vadd.f32 %v2242_v60, %v1260_v26 }
 0x123   : > { %v1281_v36 = vadd.f32 %v2242_v60, %v1259_v34  ;;  %1942 = vmatprep.mubr.msk.f32.mxu0 %vm1305_vm1, %v1295_v33  ;;  %v1298_v38 = vmax.f32 %v1282_v35, 0.0 }
 0x124   : > { %1943 = vmatmul.mubr.msk.f32.gmra.mxu0 %vm1305_vm1, %v1296_v25 }
 0x125   : > { %v1297_v37 = vmax.f32 %v1281_v36, 0.0 }
 0x127   : > { %1945 = vmatprep.mubr.msk.f32.mxu0 %vm1305_vm1, %v1297_v37 }
 0x128   : > { %1946 = vmatmul.mubr.msk.f32.gmra.mxu0 %vm1305_vm1, %v1298_v38 }
 0x1cc   : > { %v1926_v60 = vpop.f32.mrf.mxu0 }
 0x1cd   : > { %v1426_v42 = vadd.f32 %v1926_v60, %v1693_v39 }
 0x1ce   : > { %v1420_v27 = vpop.f32.mrf.mxu0 }
 0x1cf   : > { %1500 = vst.msk [vmem:[%s2297_s10 + $0x8] sm:$0xff] %vm418_vm0, %v1426_v42  ;;  %v1421_v40 = vadd.f32 %v1693_v39, %v1420_v27 }
 0x1d0   : > { %v1929_v50 = vpop.f32.mrf.mxu0 }
 0x1d1   : > { %1499 = vst.msk [vmem:[%s2297_s10] sm:$0xff] %vm418_vm0, %v1421_v40  ;;  %v1436_v52 = vadd.f32 %v1929_v50, %v1693_v39 }
 0x1d2   : > { %v1430_v55 = vpop.f32.mrf.mxu0 }
 0x1d3   : > { %1502 = vst.msk [vmem:[%s2297_s10 + $0x18] sm:$0xff] %vm418_vm0, %v1436_v52  ;;  %v1431_v45 = vadd.f32 %v1693_v39, %v1430_v55 }
 0x1d4   : > { %v1932_v12 = vpop.f32.mrf.mxu0 }
 0x1d5   : > { %1501 = vst.msk [vmem:[%s2297_s10 + $0x10] sm:$0xff] %vm418_vm0, %v1431_v45  ;;  %v1446_v41 = vadd.f32 %v1932_v12, %v1693_v39 }
 0x1d6   : > { %v1440_v56 = vpop.f32.mrf.mxu0 }
 0x1d7   : > { %1504 = vst.msk [vmem:[%s2297_s10 + $0x28] sm:$0xff] %vm418_vm0, %v1446_v41  ;;  %v1441_v57 = vadd.f32 %v1693_v39, %v1440_v56 }
 0x1d8   : > { %v1935_v48 = vpop.f32.mrf.mxu0 }
 0x1d9   : > { %1503 = vst.msk [vmem:[%s2297_s10 + $0x20] sm:$0xff] %vm418_vm0, %v1441_v57  ;;  %v1456_v58 = vadd.f32 %v1935_v48, %v1693_v39 }
 0x1da   : > { %v1450_v14 = vpop.f32.mrf.mxu0 }
 0x1db   : > { %1506 = vst.msk [vmem:[%s2297_s10 + $0x38] sm:$0xff] %vm418_vm0, %v1456_v58  ;;  %v1451_v43 = vadd.f32 %v1693_v39, %v1450_v14 }
 0x1dc   : > { %v1938_v59 = vpop.f32.mrf.mxu0 }
 0x1dd   : > { %1505 = vst.msk [vmem:[%s2297_s10 + $0x30] sm:$0xff] %vm418_vm0, %v1451_v43  ;;  %v1466_v61 = vadd.f32 %v1938_v59, %v1693_v39 }
 0x1de   : > { %v1460_v63 = vpop.f32.mrf.mxu0 }
 0x1df   : > { %1508 = vst.msk [vmem:[%s2297_s10 + $0x48] sm:$0xff] %vm418_vm0, %v1466_v61  ;;  %v1461_v53 = vadd.f32 %v1693_v39, %v1460_v63 }
 0x1e0   : > { %v1941_v16 = vpop.f32.mrf.mxu0 }
 0x1e1   : > { %1507 = vst.msk [vmem:[%s2297_s10 + $0x40] sm:$0xff] %vm418_vm0, %v1461_v53  ;;  %v1476_v44 = vadd.f32 %v1941_v16, %v1693_v39 }
 0x1e2   : > { %v1470_v0 = vpop.f32.mrf.mxu0 }
 0x1e3   : > { %1510 = vst.msk [vmem:[%s2297_s10 + $0x58] sm:$0xff] %vm418_vm0, %v1476_v44  ;;  %v1471_v1 = vadd.f32 %v1693_v39, %v1470_v0 }
 0x1e4   : > { %v1944_v2 = vpop.f32.mrf.mxu0 }
 0x1e5   : > { %1509 = vst.msk [vmem:[%s2297_s10 + $0x50] sm:$0xff] %vm418_vm0, %v1471_v1  ;;  %v1486_v62 = vadd.f32 %v1944_v2, %v1693_v39 }
 0x1e6   : > { %v1480_v3 = vpop.f32.mrf.mxu0 }
 0x1e7   : > { %1512 = vst.msk [vmem:[%s2297_s10 + $0x68] sm:$0xff] %vm418_vm0, %v1486_v62  ;;  %v1481_v18 = vadd.f32 %v1693_v39, %v1480_v3 }
 0x1e8   : > { %v1947_v46 = vpop.f32.mrf.mxu0 }
 0x1e9   : > { %1511 = vst.msk [vmem:[%s2297_s10 + $0x60] sm:$0xff] %vm418_vm0, %v1481_v18  ;;  %v1496_v4 = vadd.f32 %v1947_v46, %v1693_v39 }
 0x1ea   : > { %v1490_v5 = vpop.f32.mrf.mxu0 }
 0x1eb   : > { %1514 = vst.msk [vmem:[%s2297_s10 + $0x78] sm:$0xff] %vm418_vm0, %v1496_v4  ;;  %v1491_v6 = vadd.f32 %v1693_v39, %v1490_v5 }
 0x1ed   : > { %1513 = vst.msk [vmem:[%s2297_s10 + $0x70] sm:$0xff] %vm418_vm0, %v1491_v6 }
 0x1ee PF: > { %s18_s27 = sadd.s32 1, %s1966_s27  }
 0x1ef   : > { %p15_p4 = scmp.ge.s32.totalorder %s18_s27, 4  }
 0x1f1   :  { %17 = sbr.rel (!%p15_p4) target bundleno = 1 (0x1), region = 94 }

</bundles_post_ra>
